<compile_context>
chip_gen: v6e
topology: v6e:2x2x1
jax: 0.10.0
libtpu: 0.0.40
codegen_flags: <defaults>
</compile_context>

<pallas_src>
import functools

import jax
import jax.numpy as jnp
from jax.experimental import pallas as pl
from jax.experimental.pallas import tpu as pltpu

_LANE = 128
_SUBLANE = 8


def _round_up(x: int, m: int) -> int:
    return (x + m - 1) // m * m


def _largest_tile(padded_dim: int, cap: int, unit: int) -> int:
    """Largest multiple of `unit` that divides `padded_dim` and is <= cap."""
    cap = min(cap, padded_dim)
    best = unit
    t = unit
    while t <= cap:
        if padded_dim % t == 0:
            best = t
        t += unit
    return best


def _forecast_head_kernel(x_ref, w_ref, b_ref, o_ref, acc_ref):
    """Linear forecast head tile: acc = bias (k==0); acc += x @ w; store on last k."""
    k = pl.program_id(2)

    @pl.when(k == 0)
    def _():
        # Fold the bias into the accumulator init (f32, VPU broadcast-add once
        # per output tile) so the final-step store path is just a cast+store.
        acc_ref[...] = jnp.zeros_like(acc_ref) + b_ref[...].astype(jnp.float32)

    acc_ref[...] += jnp.dot(
        x_ref[...], w_ref[...], preferred_element_type=jnp.float32
    )

    @pl.when(k == pl.num_programs(2) - 1)
    def _():
        o_ref[...] = acc_ref[...].astype(o_ref.dtype)


def init_forecast_head(w, b, *, compute_dtype=jnp.bfloat16):
    """Pad (to 128-multiples) and cast the head parameters ONCE, outside the
    per-call hot path (this is the analogue of model init / checkpoint load).

    Args:
      w: [D, H] projection weights (D = seq_len * n_features, H = horizon).
      b: [H] or [1, H] bias.
      compute_dtype: matmul input dtype.  bf16 halves weight HBM traffic and
        is the native MXU dtype on v5e/v6e/v7x; accumulation stays f32.
        Pass jnp.float32 for exact-precision mode.
    """
    D, H = w.shape
    if b.ndim == 1:
        b = b[None, :]
    assert b.shape == (1, H), f"bias must have shape ({H},) or (1, {H}), got {b.shape}"

    Dp = _round_up(D, _LANE)
    Hp = _round_up(H, _LANE)
    w_p = jnp.pad(w, ((0, Dp - D), (0, Hp - H))).astype(compute_dtype)
    # Bias stays f32 — it is added on the f32 accumulator.
    b_p = jnp.pad(b, ((0, 0), (0, Hp - H))).astype(jnp.float32)
    return {"w": w_p, "b": b_p}


@functools.partial(jax.jit, static_argnames=("horizon", "tm", "tn", "tk"))
def forecast_forward(x, w_p, b_p, *, horizon, tm=None, tn=None, tk=None):
    """Forward pass of the (linear) forecast head.

    Args:
      x:   [batch, seq_len, n_features] lookback window (f32).
      w_p: [Dp, Hp] pre-padded (128-multiple), pre-cast projection weights.
      b_p: [1, Hp]  pre-padded f32 bias.
      horizon: true (unpadded) forecast horizon H.

    Returns:
      [batch, horizon] forecast, in x.dtype.
    """
    B, S, F = x.shape
    D = S * F
    Dp, Hp = w_p.shape
    assert Dp == _round_up(D, _LANE), (Dp, D)
    compute_dtype = w_p.dtype

    # --- Tile selection ------------------------------------------------------
    # Large-batch (compute-bound) cases benefit from 256-wide tiles on the
    # 2x256^2 MXUs of v6e/v7x; small batches stay at 128/256.
    # TODO(synk): on v5e (4x128^2 MXU) pass tm=128 explicitly for large B.
    if tm is None:
        tm_cap = 256 if B >= 256 else 128
        tm = min(tm_cap, _round_up(B, _SUBLANE))        # sublane multiple of 8
    Bp = _round_up(B, tm)

    if tn is None:
        tn_cap = 512 if B >= 256 else 256
        if Bp // tm == 1 and Hp >= 2 * _LANE:
            # Keep a parallel grid axis with extent >= 2 so both v7x
            # TensorCores get work when the batch axis collapses to one tile.
            tn_cap = min(tn_cap, Hp // 2)
        tn = _largest_tile(Hp, tn_cap, _LANE)           # divisor of Hp
    if tk is None:
        tk = _largest_tile(Dp, 2048, _LANE)             # divisor of Dp, big K tile

    # --- Per-call activation prep (the only padding on the hot path) ---------
    x_flat = x.reshape(B, D)
    x_p = jnp.pad(x_flat, ((0, Bp - B), (0, Dp - D))).astype(compute_dtype)

    grid = (Bp // tm, Hp // tn, Dp // tk)

    # --- VMEM budget: only override the compiler default when tiles actually
    # exceed it (16 MiB v5e / 32 MiB v6e,v7x).  Default tile caps use ~4 MiB.
    in_itemsize = jnp.dtype(compute_dtype).itemsize
    est_vmem = (
        2 * (tm * tk + tk * tn) * in_itemsize   # double-buffered x, w tiles
        + 2 * (tm * tn) * x.dtype.itemsize      # double-buffered output tile
        + 2 * tn * 4                            # bias tile
        + tm * tn * 4                           # f32 accumulator scratch
    )
    cp_kwargs = dict(dimension_semantics=("parallel", "parallel", "arbitrary"))
    if est_vmem > 24 * 1024 * 1024:
        cp_kwargs["vmem_limit_bytes"] = int(
            min(64 * 1024 * 1024, max(32 * 1024 * 1024, 2 * est_vmem))
        )

    out_p = pl.pallas_call(
        _forecast_head_kernel,
        out_shape=jax.ShapeDtypeStruct((Bp, Hp), x.dtype),
        grid_spec=pltpu.PrefetchScalarGridSpec(
            num_scalar_prefetch=0,
            grid=grid,
            in_specs=[
                pl.BlockSpec((tm, tk), lambda i, j, k: (i, k)),
                pl.BlockSpec((tk, tn), lambda i, j, k: (k, j)),
                pl.BlockSpec((1, tn), lambda i, j, k: (0, j)),
            ],
            out_specs=pl.BlockSpec((tm, tn), lambda i, j, k: (i, j)),
            scratch_shapes=[pltpu.VMEM((tm, tn), jnp.float32)],
        ),
        compiler_params=pltpu.CompilerParams(**cp_kwargs),
        cost_estimate=pl.CostEstimate(
            flops=2 * Bp * Dp * Hp,
            bytes_accessed=(Bp * Dp + Dp * Hp) * in_itemsize
            + (Bp * Hp) * x.dtype.itemsize
            + Hp * 4,
            transcendentals=0,
        ),
    )(x_p, w_p, b_p)

    return out_p[:B, :horizon]


if __name__ == "__main__":
    # Small shapes consistent with a forecasting forward pass.
    batch, seq_len, n_features, horizon = 2, 8, 4, 8

    key = jax.random.PRNGKey(0)
    kx, kw, kb = jax.random.split(key, 3)

    x = jax.random.normal(kx, (batch, seq_len, n_features), dtype=jnp.float32)
    # Deterministic synthetic parameters (no checkpoint load — `load` is host
    # I/O plumbing with no tensor compute).
    w = 0.02 * jax.random.normal(
        kw, (seq_len * n_features, horizon), dtype=jnp.float32
    )
    b = 0.1 * jax.random.normal(kb, (horizon,), dtype=jnp.float32)

    ref = x.reshape(batch, -1) @ w + b[None, :]

    # Exact-precision (f32 matmul) path: tight tolerance.
    params_f32 = init_forecast_head(w, b, compute_dtype=jnp.float32)
    out_f32 = forecast_forward(x, params_f32["w"], params_f32["b"], horizon=horizon)
    out_f32 = jax.block_until_ready(out_f32)
    assert out_f32.shape == (batch, horizon)
    assert jnp.allclose(out_f32, ref, atol=1e-5, rtol=1e-5)

    # Default bf16-input path (halves weight HBM traffic; f32 accumulation):
    # bounded precision tradeoff → loose tolerance.
    params_bf16 = init_forecast_head(w, b)  # compute_dtype=bf16
    out_bf16 = forecast_forward(x, params_bf16["w"], params_bf16["b"], horizon=horizon)
    out_bf16 = jax.block_until_ready(out_bf16)
    assert out_bf16.shape == (batch, horizon)
    assert jnp.allclose(out_bf16, ref, atol=3e-2, rtol=3e-2)

    print("KERNEL_OK")
</pallas_src>

<mosaic_0001>
module attributes {stable_mosaic.version = 11 : i64} {
  func.func @_forecast_head_kernel(%arg0: i32, %arg1: i32, %arg2: i32, %arg3: memref<8x128xf32, #tpu.memory_space<vmem>>, %arg4: memref<128x128xf32, #tpu.memory_space<vmem>>, %arg5: memref<1x128xf32, #tpu.memory_space<vmem>>, %arg6: memref<8x128xf32, #tpu.memory_space<vmem>>, %arg7: memref<8x128xf32, #tpu.memory_space<vmem>>) attributes {dimension_semantics = [#tpu.dimension_semantics<parallel>, #tpu.dimension_semantics<parallel>, #tpu.dimension_semantics<arbitrary>], iteration_bounds = array<i64: 1, 1, 1>, scalar_prefetch = 0 : i64, scratch_operands = 1 : i64, tpu.core_type = #tpu.core_type<tc>, window_params = [{transform_indices = @transform_0, window_bounds = array<i64: 8, 128>}, {transform_indices = @transform_1, window_bounds = array<i64: 128, 128>}, {transform_indices = @transform_2, window_bounds = array<i64: 1, 128>}, {transform_indices = @transform_3, window_bounds = array<i64: 8, 128>}]} {
    %c0_i32 = arith.constant 0 : i32
    %0 = arith.cmpi eq, %arg2, %c0_i32 : i32
    %1 = arith.extui %0 : i1 to i32
    %c0_i32_0 = arith.constant 0 : i32
    %2 = arith.cmpi ne, %1, %c0_i32_0 : i32
    scf.if %2 {
      %cst_10 = arith.constant 0.000000e+00 : f32
      %12 = vector.broadcast %cst_10 : f32 to vector<8x128xf32>
      %c0_11 = arith.constant 0 : index
      %c0_12 = arith.constant 0 : index
      %13 = vector.load %arg5[%c0_11, %c0_12] : memref<1x128xf32, #tpu.memory_space<vmem>>, vector<1x128xf32>
      %14 = vector.broadcast %13 : vector<1x128xf32> to vector<8x128xf32>
      %15 = arith.addf %12, %14 : vector<8x128xf32>
      %c0_13 = arith.constant 0 : index
      %c0_14 = arith.constant 0 : index
      %16 = vector.load %arg7[%c0_13, %c0_14] : memref<8x128xf32, #tpu.memory_space<vmem>>, vector<8x128xf32>
      tpu.vector_store %arg7[%c0_13, %c0_14], %15 {strides = array<i32>} : memref<8x128xf32, #tpu.memory_space<vmem>>, vector<8x128xf32>,
    } else {
    }
    %c0 = arith.constant 0 : index
    %c0_1 = arith.constant 0 : index
    %3 = vector.load %arg7[%c0, %c0_1] : memref<8x128xf32, #tpu.memory_space<vmem>>, vector<8x128xf32>
    %c0_2 = arith.constant 0 : index
    %c0_3 = arith.constant 0 : index
    %4 = vector.load %arg3[%c0_2, %c0_3] : memref<8x128xf32, #tpu.memory_space<vmem>>, vector<8x128xf32>
    %c0_4 = arith.constant 0 : index
    %c0_5 = arith.constant 0 : index
    %5 = vector.load %arg4[%c0_4, %c0_5] : memref<128x128xf32, #tpu.memory_space<vmem>>, vector<128x128xf32>
    %cst = arith.constant dense<0.000000e+00> : vector<8x128xf32>
    %6 = tpu.matmul %4, %5, %cst {dimension_numbers = #tpu.dot_dimension_numbers<[1], [0], [0], [1], [0, 0, 1, 1], [], []>} : vector<8x128xf32>, vector<128x128xf32>, vector<8x128xf32> -> vector<8x128xf32>
    %7 = arith.addf %3, %6 : vector<8x128xf32>
    %c0_6 = arith.constant 0 : index
    %c0_7 = arith.constant 0 : index
    %8 = vector.load %arg7[%c0_6, %c0_7] : memref<8x128xf32, #tpu.memory_space<vmem>>, vector<8x128xf32>
    tpu.vector_store %arg7[%c0_6, %c0_7], %7 {strides = array<i32>} : memref<8x128xf32, #tpu.memory_space<vmem>>, vector<8x128xf32>,
    %c0_i32_8 = arith.constant 0 : i32
    %9 = arith.cmpi eq, %arg2, %c0_i32_8 : i32
    %10 = arith.extui %9 : i1 to i32
    %c0_i32_9 = arith.constant 0 : i32
    %11 = arith.cmpi ne, %10, %c0_i32_9 : i32
    scf.if %11 {
      %c0_10 = arith.constant 0 : index
      %c0_11 = arith.constant 0 : index
      %12 = vector.load %arg7[%c0_10, %c0_11] : memref<8x128xf32, #tpu.memory_space<vmem>>, vector<8x128xf32>
      %c0_12 = arith.constant 0 : index
      %c0_13 = arith.constant 0 : index
      %13 = vector.load %arg6[%c0_12, %c0_13] : memref<8x128xf32, #tpu.memory_space<vmem>>, vector<8x128xf32>
      tpu.vector_store %arg6[%c0_12, %c0_13], %12 {strides = array<i32>} : memref<8x128xf32, #tpu.memory_space<vmem>>, vector<8x128xf32>,
    } else {
    }
    return
  }
  func.func @transform_0(%arg0: i32, %arg1: i32, %arg2: i32) -> (i32, i32) {
    %c0_i32 = arith.constant 0 : i32
    return %arg0, %arg2 : i32, i32
  }
  func.func @transform_1(%arg0: i32, %arg1: i32, %arg2: i32) -> (i32, i32) {
    %c0_i32 = arith.constant 0 : i32
    return %arg2, %arg1 : i32, i32
  }
  func.func @transform_2(%arg0: i32, %arg1: i32, %arg2: i32) -> (i32, i32) {
    %c0_i32 = arith.constant 0 : i32
    %c0_i32_0 = arith.constant 0 : i32
    return %c0_i32, %arg1 : i32, i32
  }
  func.func @transform_3(%arg0: i32, %arg1: i32, %arg2: i32) -> (i32, i32) {
    %c0_i32 = arith.constant 0 : i32
    return %arg0, %arg1 : i32, i32
  }
}

</mosaic_0001>

<bundles_post_ra>
// kernel: forecast_forward.1
= control target key start
LH: loop header
LB: loop body
LE: loop exit
PB: predicated region body
PF: predicated region fallthrough
CT: control target
= control target key end

     0   :  { %8 = vsyncpa [#allocation4], 0  ;;  %s221_s12 = smov [#allocation3]   ;;  %s258_s0 = inlined_call_operand.vmem [shape: f32[8,128], index: 0, kind: input, shape index: {}]   ;;  %s259_s1 = inlined_call_operand.hbm [shape: f32[128,128], index: 1, kind: input, shape index: {}]   ;;  %s260_s2 = inlined_call_operand.vmem [shape: f32[1,128], index: 2, kind: input, shape index: {}]   ;;  %s261_s3 = inlined_call_operand.vmem [shape: f32[8,128], index: 3, kind: output, shape index: {}]  }
   0x1   :  { %s16_s13 = sshll.u32 %s221_s12, 4  ;;  %s17_s13 = int_to_ptr.vmem [resolvable:$true] %s16_s13 }
   0x2   :  { %s207_s14 = scalar_lea.vmem %s17_s13, 2048  ;;  %p212_p1 = scmp.lt.s32.totalorder %s17_s13, %s17_s13 }
   0x3   :  { %p208_p0 = scmp.ne.s32.totalorder %s17_s13, %s207_s14  ;;  %p213_p2 = scmp.lt.s32.totalorder %s207_s14, %s207_s14 }
   0x5   :  { %p214_p3 = por %p213_p2, %p212_p1 }
   0x7   :  { %p215_p4 = pnand %p214_p3, %p208_p0 }
   0x9   :  { %218 = shalt.err (!%p215_p4)
}
   0xa   :  { %s222_s15 = smov 128   ;;  %s223_s16 = smov 8  }
   0xb   :  { %22 = dma.hbm_to_vmem [thread:$0]  %s259_s1, 2048, %s17_s13, [#allocation4], %s222_s15, %s222_s15, %s223_s16  }
   0xc   :  { %219 = dma.done.wait [#allocation4], 2048  }
   0xd   :  { %220 = vsyncadd [#allocation4], 4294965248  ;;  %v224_v0 = vmov 0.0   ;;  %vm225_vm0 = vmmov 0   ;;  %v58_v1 = vld [vmem:[#allocation3 + $0x78] sm:$0xff]  ;;  %v57_v2 = vld [vmem:[#allocation3 + $0x70] sm:$0xff] }
   0xe   :  { %159 = vmatprep.subr.mxu0 %v224_v0  ;;  %191 = vmatprep.mubr.msk.f32.mxu0 %vm225_vm0, %v224_v0  ;;  %v56_v3 = vld [vmem:[#allocation3 + $0x68] sm:$0xff]  ;;  %v55_v4 = vld [vmem:[#allocation3 + $0x60] sm:$0xff]  ;;  %v54_v5 = vld [vmem:[#allocation3 + $0x58] sm:$0xff] }
   0xf   :  { %160 = vmatpush3.msra.mxu0 %v58_v1  ;;  %v53_v6 = vld [vmem:[#allocation3 + $0x50] sm:$0xff]  ;;  %v52_v7 = vld [vmem:[#allocation3 + $0x48] sm:$0xff]  ;;  %v51_v8 = vld [vmem:[#allocation3 + $0x40] sm:$0xff] }
  0x10   :  { %161 = vmatprep.subr.mxu0 %v224_v0  ;;  %v50_v9 = vld [vmem:[#allocation3 + $0x38] sm:$0xff]  ;;  %v49_v10 = vld [vmem:[#allocation3 + $0x30] sm:$0xff]  ;;  %v48_v11 = vld [vmem:[#allocation3 + $0x28] sm:$0xff] }
  0x11   :  { %162 = vmatpush3.msra.mxu0 %v57_v2  ;;  %v47_v12 = vld [vmem:[#allocation3 + $0x20] sm:$0xff]  ;;  %v46_v13 = vld [vmem:[#allocation3 + $0x18] sm:$0xff]  ;;  %v45_v14 = vld [vmem:[#allocation3 + $0x10] sm:$0xff] }
  0x12   :  { %163 = vmatprep.subr.mxu0 %v224_v0  ;;  %v44_v15 = vld [vmem:[#allocation3 + $0x8] sm:$0xff]  ;;  %v43_v16 = vld [vmem:[#allocation3] sm:$0xff] }
  0x13   :  { %164 = vmatpush3.msra.mxu0 %v56_v3  ;;  %v42_v17 = vld [vmem:[%s258_s0] sm:$0xff] }
  0x14   :  { %165 = vmatprep.subr.mxu0 %v224_v0  ;;  %v141_v18 = vld [vmem:[%s260_s2] ss:$0 sm:$0xff] }
  0x15   :  { %166 = vmatpush3.msra.mxu0 %v55_v4 }
  0x16   :  { %167 = vmatprep.subr.mxu0 %v224_v0 }
  0x17   :  { %168 = vmatpush3.msra.mxu0 %v54_v5 }
  0x18   :  { %169 = vmatprep.subr.mxu0 %v224_v0 }
  0x19   :  { %170 = vmatpush3.msra.mxu0 %v53_v6 }
  0x1a   :  { %171 = vmatprep.subr.mxu0 %v224_v0 }
  0x1b   :  { %172 = vmatpush3.msra.mxu0 %v52_v7 }
  0x1c   :  { %173 = vmatprep.subr.mxu0 %v224_v0 }
  0x1d   :  { %174 = vmatpush3.msra.mxu0 %v51_v8 }
  0x1e   :  { %175 = vmatprep.subr.mxu0 %v224_v0 }
  0x1f   :  { %176 = vmatpush3.msra.mxu0 %v50_v9 }
  0x20   :  { %177 = vmatprep.subr.mxu0 %v224_v0 }
  0x21   :  { %178 = vmatpush3.msra.mxu0 %v49_v10 }
  0x22   :  { %179 = vmatprep.subr.mxu0 %v224_v0 }
  0x23   :  { %180 = vmatpush3.msra.mxu0 %v48_v11 }
  0x24   :  { %181 = vmatprep.subr.mxu0 %v224_v0 }
  0x25   :  { %182 = vmatpush3.msra.mxu0 %v47_v12 }
  0x26   :  { %183 = vmatprep.subr.mxu0 %v224_v0 }
  0x27   :  { %184 = vmatpush3.msra.mxu0 %v46_v13 }
  0x28   :  { %185 = vmatprep.subr.mxu0 %v224_v0 }
  0x29   :  { %186 = vmatpush3.msra.mxu0 %v45_v14 }
  0x2a   :  { %187 = vmatprep.subr.mxu0 %v224_v0 }
  0x2b   :  { %188 = vmatpush3.msra.mxu0 %v44_v15 }
  0x2c   :  { %189 = vmatprep.subr.mxu0 %v224_v0 }
  0x2d   :  { %190 = vmatpush3.msra.mxu0 %v43_v16 }
  0x2e   :  { %192 = vmatmul.mubr.f32.vlgmr.msra.gmra.mxu0 %v42_v17 }
  0xee   :  { %v125_v19 = vpop.f32.mrf.mxu0 }
  0xef   :  { %v129_v20 = vadd.f32 %v141_v18, %v125_v19 }
  0xf0   :  { %v193_v21 = vpop.f32.mrf.mxu0 }
  0xf1   :  { %135 = vst [vmem:[%s261_s3] sm:$0xff] %v129_v20 }
  0xf2   :  { %140 = vsyncpa [#allocation4], 1 }

</bundles_post_ra>
